<compile_context>
chip_gen: v7x
topology: tpu7x:2x2x1
jax: 0.10.0
libtpu: 0.0.40
codegen_flags: <defaults>
</compile_context>

<pallas_src>
import jax
import jax.numpy as jnp
from jax.experimental import pallas as pl
from jax.experimental.pallas import tpu as pltpu

LANE = 128   # lane width (last dim alignment for MXU / unmasked vst)
SUB = 8      # sublane width (second-to-last dim alignment)
_MIB = 1024 * 1024


def _round_up(n: int, m: int) -> int:
    return ((n + m - 1) // m) * m


def _vmem_budget_bytes() -> int:
    """Generation-aware scoped-VMEM budget, with headroom under physical."""
    try:
        cap = int(pltpu.get_tpu_info().vmem_capacity_bytes)
    except Exception:
        cap = 64 * _MIB  # assume the smallest part (v7x: 64 MiB / TensorCore)
    # ~100 MiB on 128 MiB parts (v5e/v6e), ~48 MiB on 64 MiB parts (v7x).
    return int(min(100 * _MIB, (cap * 3) // 4))


def _logreg_kernel(x_ref, w_ref, b_ref, o_ref):
    # MXU matmul: bf16 tiles, f32 accumulation.
    z = jnp.dot(x_ref[...], w_ref[...], preferred_element_type=jnp.float32)
    z = z + b_ref[...]  # broadcast [1, d_out_p] bias over rows (VPU, f32)
    # Numerically-stable sigmoid via tanh: ONE EUP op (vs exp + reciprocal),
    # no overflow hazard for large |z|; the mul/add ride the idle VALU slots.
    o_ref[...] = (0.5 * jnp.tanh(0.5 * z) + 0.5).astype(o_ref.dtype)


def prepare_params(w, b, *, compute_dtype=jnp.bfloat16):
    """One-time parameter prep (call at model init, NOT per forward).

    w: [D_out, D_in] (PyTorch Linear layout), b: [D_out].
    Returns (w_t, b_row): pre-transposed, lane-padded bf16 weight
    [d_in_p, d_out_p] and f32 bias row [1, d_out_p].
    """
    D_out, D_in = w.shape
    d_in_p = _round_up(D_in, LANE)
    d_out_p = _round_up(D_out, LANE)
    w_t = jnp.pad(jnp.transpose(w), ((0, d_in_p - D_in), (0, d_out_p - D_out)))
    w_t = w_t.astype(compute_dtype)
    b_row = jnp.pad(b.reshape(1, D_out), ((0, 0), (0, d_out_p - D_out)))
    b_row = b_row.astype(jnp.float32)
    return w_t, b_row


def logistic_regression(x, w_t, b_row, d_out, *, block_m: int = 1024):
    """sigmoid(x @ W + b) with pre-prepared (transposed / padded / bf16) params.

    x: [B, D_in] f32 (or bf16), w_t: [d_in_p, d_out_p] bf16, b_row: [1, d_out_p] f32.
    Returns [B, d_out] f32.
    """
    B, D_in = x.shape
    d_in_p, d_out_p = w_t.shape
    compute_dtype = w_t.dtype
    x_bytes = jnp.dtype(compute_dtype).itemsize
    out_bytes = 4

    # Per-call x prep: lane-pad + cast only if needed (single fused XLA op).
    # No batch padding -- partial edge blocks are handled by the cdiv grid.
    if D_in != d_in_p or x.dtype != compute_dtype:
        x_p = jnp.pad(x, ((0, 0), (0, d_in_p - D_in))).astype(compute_dtype)
    else:
        x_p = x

    # Size the batch tile from the VMEM budget:
    #   resident W (x1, single-buffered) + bias + 2x(x tile) + 2x(out tile) <= budget.
    budget = _vmem_budget_bytes()
    resident = d_in_p * d_out_p * x_bytes + d_out_p * out_bytes
    per_row = 2 * (d_in_p * x_bytes + d_out_p * out_bytes)
    tm_cap = max(SUB, ((budget - resident - _MIB) // per_row) // SUB * SUB)
    tm = min(block_m, tm_cap, _round_up(B, SUB))
    # Keep >= 2 grid steps when the batch allows it so v7x's 2nd TensorCore gets
    # work via the "parallel" axis; negligible cost on single-TC v5e/v6e.
    tm = min(tm, max(SUB, _round_up((B + 1) // 2, SUB)))
    tm = max(SUB, (tm // SUB) * SUB)

    grid = (pl.cdiv(B, tm),)
    # TODO(synk): if the resident weight ever exceeds the VMEM budget, add a K
    # grid axis with an f32 accumulator scratch + pl.when init/finalize.

    out_p = pl.pallas_call(
        _logreg_kernel,
        out_shape=jax.ShapeDtypeStruct((B, d_out_p), jnp.float32),
        grid=grid,
        in_specs=[
            # x tile marches along the batch axis (default double-buffered DMA).
            pl.BlockSpec((tm, d_in_p), lambda i: (i, 0)),
            # Weight / bias are grid-invariant: single-buffer them so the
            # resident footprint is 1x, not 2x (matters on v7x's 64 MiB/TC).
            pl.BlockSpec((d_in_p, d_out_p), lambda i: (0, 0),
                         pipeline_mode=pl.Buffered(1)),
            pl.BlockSpec((1, d_out_p), lambda i: (0, 0),
                         pipeline_mode=pl.Buffered(1)),
        ],
        out_specs=pl.BlockSpec((tm, d_out_p), lambda i: (i, 0)),
        compiler_params=pltpu.CompilerParams(
            dimension_semantics=("parallel",),
            vmem_limit_bytes=int(budget)),
        cost_estimate=pl.CostEstimate(
            flops=2 * B * d_in_p * d_out_p,
            transcendentals=B * d_out_p,
            bytes_accessed=(B * d_in_p * x_bytes          # x stream (bf16)
                            + d_in_p * d_out_p * x_bytes   # resident W (bf16)
                            + d_out_p * out_bytes          # bias
                            + B * d_out_p * out_bytes)),   # output (f32)
    )(x_p, w_t, b_row)

    return out_p[:, :d_out] if d_out != d_out_p else out_p


if __name__ == "__main__":
    # Small config consistent with nn.Linear(input_dim, output_dim).
    batch, input_dim, output_dim = 8, 32, 16

    key = jax.random.PRNGKey(0)
    kx, kw, kb = jax.random.split(key, 3)

    x = jax.random.normal(kx, (batch, input_dim), dtype=jnp.float32)

    # Params drawn like PyTorch Linear init: U(-1/sqrt(in), 1/sqrt(in)).
    bound = 1.0 / jnp.sqrt(jnp.float32(input_dim))
    w = jax.random.uniform(kw, (output_dim, input_dim), jnp.float32, -bound, bound)
    b = jax.random.uniform(kb, (output_dim,), jnp.float32, -bound, bound)

    # One-time parameter prep (init-time, not in the per-call path).
    w_t, b_row = prepare_params(w, b)

    out = logistic_regression(x, w_t, b_row, output_dim)
    jax.block_until_ready(out)

    # Reference check in plain JAX (bf16 matmul inputs -> ~1e-3-level error).
    ref = jax.nn.sigmoid(x @ w.T + b)
    assert out.shape == (batch, output_dim)
    assert out.dtype == jnp.float32
    assert jnp.allclose(out, ref, atol=1e-2, rtol=1e-2), float(
        jnp.max(jnp.abs(out - ref)))

    print("KERNEL_OK")
</pallas_src>

<mosaic_0001>
module attributes {stable_mosaic.version = 11 : i64} {
  func.func @_logreg_kernel(%arg0: i32, %arg1: memref<8x128xbf16, #tpu.memory_space<vmem>>, %arg2: memref<128x128xbf16, #tpu.memory_space<vmem>>, %arg3: memref<1x128xf32, #tpu.memory_space<vmem>>, %arg4: memref<8x128xf32, #tpu.memory_space<vmem>>) attributes {dimension_semantics = [#tpu.dimension_semantics<parallel>], iteration_bounds = array<i64: 1>, scalar_prefetch = 0 : i64, scratch_operands = 0 : i64, tpu.core_type = #tpu.core_type<tc>, window_params = [{transform_indices = @transform_0, window_bounds = array<i64: 8, 128>}, {pipeline_mode = #tpu.pipeline_mode<synchronous>, transform_indices = @transform_1, window_bounds = array<i64: 128, 128>}, {pipeline_mode = #tpu.pipeline_mode<synchronous>, transform_indices = @transform_2, window_bounds = array<i64: 1, 128>}, {transform_indices = @transform_3, window_bounds = array<i64: 8, 128>}]} {
    %c0 = arith.constant 0 : index
    %c0_0 = arith.constant 0 : index
    %0 = vector.load %arg1[%c0, %c0_0] : memref<8x128xbf16, #tpu.memory_space<vmem>>, vector<8x128xbf16>
    %c0_1 = arith.constant 0 : index
    %c0_2 = arith.constant 0 : index
    %1 = vector.load %arg2[%c0_1, %c0_2] : memref<128x128xbf16, #tpu.memory_space<vmem>>, vector<128x128xbf16>
    %cst = arith.constant dense<0.000000e+00> : vector<8x128xf32>
    %2 = tpu.matmul %0, %1, %cst {dimension_numbers = #tpu.dot_dimension_numbers<[1], [0], [0], [1], [0, 0, 1, 1], [], []>} : vector<8x128xbf16>, vector<128x128xbf16>, vector<8x128xf32> -> vector<8x128xf32>
    %c0_3 = arith.constant 0 : index
    %c0_4 = arith.constant 0 : index
    %3 = vector.load %arg3[%c0_3, %c0_4] : memref<1x128xf32, #tpu.memory_space<vmem>>, vector<1x128xf32>
    %4 = vector.broadcast %3 : vector<1x128xf32> to vector<8x128xf32>
    %5 = arith.addf %2, %4 : vector<8x128xf32>
    %cst_5 = arith.constant 5.000000e-01 : f32
    %6 = vector.broadcast %cst_5 : f32 to vector<8x128xf32>
    %7 = arith.mulf %6, %5 : vector<8x128xf32>
    %8 = math.tanh %7 : vector<8x128xf32>
    %cst_6 = arith.constant 5.000000e-01 : f32
    %9 = vector.broadcast %cst_6 : f32 to vector<8x128xf32>
    %10 = arith.mulf %9, %8 : vector<8x128xf32>
    %cst_7 = arith.constant 5.000000e-01 : f32
    %11 = vector.broadcast %cst_7 : f32 to vector<8x128xf32>
    %12 = arith.addf %10, %11 : vector<8x128xf32>
    %c0_8 = arith.constant 0 : index
    %c0_9 = arith.constant 0 : index
    %13 = vector.load %arg4[%c0_8, %c0_9] : memref<8x128xf32, #tpu.memory_space<vmem>>, vector<8x128xf32>
    tpu.vector_store %arg4[%c0_8, %c0_9], %12 {strides = array<i32>} : memref<8x128xf32, #tpu.memory_space<vmem>>, vector<8x128xf32>,
    return
  }
  func.func @transform_0(%arg0: i32) -> (i32, i32) {
    %c0_i32 = arith.constant 0 : i32
    %c0_i32_0 = arith.constant 0 : i32
    return %arg0, %c0_i32 : i32, i32
  }
  func.func @transform_1(%arg0: i32) -> (i32, i32) {
    %c0_i32 = arith.constant 0 : i32
    %c0_i32_0 = arith.constant 0 : i32
    %c0_i32_1 = arith.constant 0 : i32
    return %c0_i32, %c0_i32_0 : i32, i32
  }
  func.func @transform_2(%arg0: i32) -> (i32, i32) {
    %c0_i32 = arith.constant 0 : i32
    %c0_i32_0 = arith.constant 0 : i32
    %c0_i32_1 = arith.constant 0 : i32
    return %c0_i32, %c0_i32_0 : i32, i32
  }
  func.func @transform_3(%arg0: i32) -> (i32, i32) {
    %c0_i32 = arith.constant 0 : i32
    %c0_i32_0 = arith.constant 0 : i32
    return %arg0, %c0_i32 : i32, i32
  }
}

</mosaic_0001>

<bundles_post_ra>
// kernel: tpu_custom_call.1
= control target key start
LH: loop header
LB: loop body
LE: loop exit
PB: predicated region body
PF: predicated region fallthrough
CT: control target
= control target key end

     0   :  { %8 = vsyncpa [#allocation3], 0  ;;  %s375_s0 = inlined_call_operand.hbm [shape: bf16[8,128], index: 0, kind: input, shape index: {}]   ;;  %s376_s1 = inlined_call_operand.hbm [shape: bf16[128,128], index: 1, kind: input, shape index: {}]   ;;  %s377_s2 = inlined_call_operand.vmem [shape: f32[1,128], index: 2, kind: input, shape index: {}]   ;;  %s378_s3 = inlined_call_operand.hbm [shape: f32[8,128], index: 3, kind: output, shape index: {}]  }
   0x1   :  { %9 = vsyncpa [#allocation6], 0 }
   0x2   :  { %10 = vsyncpa [#allocation4], 0  ;;  %s302_s12 = smov [#allocation2]   ;;  %s303_s14 = smov [#allocation5]  }
   0x3   :  { %s17_s13 = sshll.u32 %s302_s12, 4  ;;  %s26_s15 = sshll.u32 %s303_s14, 4  ;;  %s18_s13 = int_to_ptr.vmem [resolvable:$true] %s17_s13  ;;  %s329_s15 = int_to_ptr.vmem [resolvable:$true] %s26_s15 }
   0x4   :  { %s230_s18 = scalar_lea.hbm %s375_s0, 64 }
   0x5   :  { %p231_p0 = scmp.ne.s32.totalorder %s375_s0, %s230_s18  ;;  %p234_p1 = scmp.lt.u32.totalorder %s230_s18, %s375_s0 }
   0x7   :  { %p236_p2 = pnand %p234_p1, %p231_p0 }
   0x9   :  { %239 = shalt.err (!%p236_p2)
}
   0xa   :  { %s240_s23 = scalar_lea.vmem %s18_s13, 64  ;;  %p245_p4 = scmp.lt.s32.totalorder %s18_s13, %s18_s13 }
   0xb   :  { %p241_p3 = scmp.ne.s32.totalorder %s18_s13, %s240_s23  ;;  %p246_p5 = scmp.lt.s32.totalorder %s240_s23, %s240_s23 }
   0xd   :  { %p247_p6 = por %p246_p5, %p245_p4 }
   0xf   :  { %p248_p7 = pnand %p247_p6, %p241_p3 }
  0x11   :  { %251 = shalt.err (!%p248_p7)
}
  0x12   :  { %20 = dma.hbm_to_vmem [thread:$0]  %s375_s0, 64, %s18_s13, [#allocation3]  }
  0x13   :  { %s252_s28 = scalar_lea.hbm %s376_s1, 1024 }
  0x14   :  { %p253_p8 = scmp.ne.s32.totalorder %s376_s1, %s252_s28  ;;  %p256_p9 = scmp.lt.u32.totalorder %s252_s28, %s376_s1 }
  0x16   :  { %p258_p10 = pnand %p256_p9, %p253_p8 }
  0x18   :  { %261 = shalt.err (!%p258_p10)
}
  0x19   :  { %s262_s6 = scalar_lea.vmem %s329_s15, 1024  ;;  %p267_p12 = scmp.lt.s32.totalorder %s329_s15, %s329_s15 }
  0x1a   :  { %p263_p11 = scmp.ne.s32.totalorder %s329_s15, %s262_s6  ;;  %p268_p13 = scmp.lt.s32.totalorder %s262_s6, %s262_s6 }
  0x1c   :  { %p269_p0 = por %p268_p13, %p267_p12 }
  0x1e   :  { %p270_p1 = pnand %p269_p0, %p263_p11 }
  0x20   :  { %273 = shalt.err (!%p270_p1)
}
  0x21   :  { %s304_s0 = smov 64   ;;  %s305_s7 = smov 4  }
  0x22   :  { %32 = dma.hbm_to_vmem [thread:$0]  %s376_s1, 1024, %s329_s15, [#allocation6], %s304_s0, %s304_s0, %s305_s7  }
  0x23   :  { %296 = dma.done.wait [#allocation3], 64  }
  0x24   :  { %297 = vsyncadd [#allocation3], 4294967232 }
  0x25   :  { %298 = dma.done.wait [#allocation6], 1024  }
  0x26   :  { %299 = vsyncadd [#allocation6], 4294966272  ;;  %v306_v0 = vmov 0.0   ;;  %vm307_vm0 = vmmov 0   ;;  %v220_v1 = vld [vmem:[#allocation5] sm:$0xff]   ;;  %v221_v2 = vld [vmem:[#allocation5 + $0x8] sm:$0xff]  }
  0x27   :  { %193 = vmatprep.subr.bf16.mxu0 %v306_v0  ;;  %209 = vmatprep.mubr.msk.bf16.mxu0 %vm307_vm0, %v306_v0  ;;  %v222_v3 = vld [vmem:[#allocation5 + $0x10] sm:$0xff]   ;;  %v223_v4 = vld [vmem:[#allocation5 + $0x18] sm:$0xff]   ;;  %v224_v5 = vld [vmem:[#allocation5 + $0x20] sm:$0xff]   ;;  %s308_s11 = smov [#allocation7]  }
  0x28   :  { %194 = vmatpush3.bf16.msra.mxu0 %v220_v1  ;;  %v225_v6 = vld [vmem:[#allocation5 + $0x28] sm:$0xff]   ;;  %v226_v7 = vld [vmem:[#allocation5 + $0x30] sm:$0xff]   ;;  %v227_v8 = vld [vmem:[#allocation5 + $0x38] sm:$0xff]   ;;  %s165_s12 = sshll.u32 %s308_s11, 4  ;;  %s166_s12 = int_to_ptr.vmem [resolvable:$true] %s165_s12 }
  0x29   :  { %195 = vmatprep.subr.bf16.mxu0 %v306_v0  ;;  %v42_v9 = vld [vmem:[#allocation2] sm:$0xf]  ;;  %s274_s13 = scalar_lea.vmem %s166_s12, 128  ;;  %p279_p3 = scmp.lt.s32.totalorder %s166_s12, %s166_s12 }
  0x2a   :  { %v175_v10 = vld [vmem:[%s377_s2] ss:$0 sm:$0xff]  ;;  %p275_p2 = scmp.ne.s32.totalorder %s166_s12, %s274_s13  ;;  %p280_p4 = scmp.lt.s32.totalorder %s274_s13, %s274_s13 }
  0x2c   :  { %196 = vmatpush3.bf16.msra.mxu0 %v221_v2  ;;  %p281_p5 = por %p280_p4, %p279_p3 }
  0x2d   :  { %197 = vmatprep.subr.bf16.mxu0 %v306_v0 }
  0x2e   :  { %p282_p6 = pnand %p281_p5, %p275_p2 }
  0x30   :  { %198 = vmatpush3.bf16.msra.mxu0 %v222_v3 }
  0x31   :  { %199 = vmatprep.subr.bf16.mxu0 %v306_v0 }
  0x34   :  { %200 = vmatpush3.bf16.msra.mxu0 %v223_v4 }
  0x35   :  { %201 = vmatprep.subr.bf16.mxu0 %v306_v0 }
  0x38   :  { %202 = vmatpush3.bf16.msra.mxu0 %v224_v5 }
  0x39   :  { %203 = vmatprep.subr.bf16.mxu0 %v306_v0 }
  0x3c   :  { %204 = vmatpush3.bf16.msra.mxu0 %v225_v6 }
  0x3d   :  { %205 = vmatprep.subr.bf16.mxu0 %v306_v0 }
  0x40   :  { %206 = vmatpush3.bf16.msra.mxu0 %v226_v7 }
  0x41   :  { %207 = vmatprep.subr.bf16.mxu0 %v306_v0 }
  0x44   :  { %208 = vmatpush3.bf16.msra.mxu0 %v227_v8 }
  0x47   :  { %210 = vmatmul.mubr.bf16.vlgmr.msra.gmra.mrb[0].mxu0 %v42_v9 }
 0x11a   :  { %v148_v11 = vpop.f32.mrb[0].mxu0 }
 0x11b   :  { %v149_v12 = vadd.f32 %v175_v10, %v148_v11  ;;  %v211_v13 = vpop.f32.mrb[1].mxu0 }
 0x11c   :  { %v151_v14 = vpop.f32.mrb[2].mxu0 }
 0x11d   :  { %v154_v15 = vmul.f32 0.5, %v149_v12  ;;  %v212_v16 = vpop.f32.mrb[3].mxu0 }
 0x11f   :  { %228 = vtanh.f32 %v154_v15 }
 0x129   :  { %v229_v17 = vpop.eup %228 }
 0x12a   :  { %v156_v18 = vmul.f32 0.5, %v229_v17 }
 0x12c   :  { %v157_v19 = vadd.f32 0.5, %v156_v18 }
 0x12e   :  { %158 = vst [vmem:[#allocation7] sm:$0xff] %v157_v19 }
 0x12f   :  { %285 = shalt.err (!%p282_p6)
}
 0x130   :  { %s286_s15 = scalar_lea.hbm %s378_s3, 128 }
 0x131   :  { %p287_p7 = scmp.ne.s32.totalorder %s378_s3, %s286_s15  ;;  %p290_p8 = scmp.lt.u32.totalorder %s286_s15, %s378_s3 }
 0x133   :  { %p292_p9 = pnand %p290_p8, %p287_p7 }
 0x135   :  { %295 = shalt.err (!%p292_p9)
}
 0x136   :  { %168 = dma.vmem_to_hbm [thread:$0]  %s166_s12, 128, %s378_s3, [#allocation4]  }
 0x137   :  { %300 = dma.done.wait [#allocation4], 128  }
 0x138   :  { %301 = vsyncadd [#allocation4], 4294967168 }
 0x139   :  { %172 = vsyncpa [#allocation3], 1 }
 0x13a   :  { %173 = vsyncpa [#allocation6], 1 }
 0x13b   :  { %174 = vsyncpa [#allocation4], 1 }

</bundles_post_ra>
